<compile_context>
chip_gen: v6e
topology: v6e:2x2x1
jax: 0.10.0
libtpu: 0.0.40
codegen_flags: <defaults>
</compile_context>

<pallas_src>
import functools

import jax
import jax.numpy as jnp
from jax.experimental import pallas as pl
from jax.experimental.pallas import tpu as pltpu

# Column schema (static — matches the PyTorch module's X_columns usage).
X_COLUMNS = ["blue", "green", "red", "vnir1", "vnir4", "swir1", "swir2", "nir"]
Y_COLUMN = "yield"
NIR_IDX = X_COLUMNS.index("vnir4")   # the module uses X_columns.index('vnir4')
RED_IDX = X_COLUMNS.index("red")

HIDDEN = 30            # Linear(1, 30)
LEAKY_SLOPE = 0.01     # nn.LeakyReLU() default negative_slope
LANES = 128
SUBLANES = 8
MAX_TILE_ROWS = 8192   # 8192*128 samples / grid step (4 MiB f32 per output block)
MIN_GRID_STEPS = 4     # target >= 4 grid steps so v7x dual-TC sharding engages


def _round_up(a, b):
    return (a + b - 1) // b * b


def _ann_savi_kernel(params_ref, x_ref, o_ref):
    """Fused SAVI + folded Linear(1,30)+LeakyReLU+Linear(30,1) on a lane-dense tile.

    params_ref : SMEM (3, HIDDEN) f32
                   row0: c_j = b1_j / (w1_j*(1+L))
                   row1: g_j = 0.5*(1-alpha)*w2_j*|w1_j*(1+L)|
                   row2: [K1, K0, L, 0, ...]
    x_ref      : VMEM (2, TR, 128) f32   -- plane 0 = nir, plane 1 = red
    o_ref      : VMEM (TR, 128) f32
    """
    K1 = params_ref[2, 0]
    K0 = params_ref[2, 1]
    L = params_ref[2, 2]

    nir = x_ref[0]
    red = x_ref[1]

    # SAVI ratio; the (1+L) factor is folded into K1 / c_j / g_j on the host.
    s = (nir - red) / (nir + red + L)

    # out = K1*s + K0 + sum_j g_j * |s + c_j|
    # (exact rewrite of sum_j w2_j*LeakyReLU(w1_j*s_full + b1_j) + b2).
    # Only two live tensors (s, acc) per step -> stays in vregs.
    acc = s * K1 + K0
    for j in range(HIDDEN):
        acc = acc + params_ref[1, j] * jnp.abs(s + params_ref[0, j])

    o_ref[...] = acc


@functools.partial(jax.jit, static_argnames=("tile_rows",))
def ann_savi_forward(x, L, w1, b1, w2, b2, *, tile_rows=MAX_TILE_ROWS):
    """x: (N, F) in X_COLUMNS order. Returns (N,) like the module's reshape(-1)."""
    n, _ = x.shape
    xf = x.astype(jnp.float32)

    # ---- host-side (jitted, fused) preprocessing -------------------------------
    # Only 2 of the 8 columns are used: extract, pad and stack them in ONE fused
    # pass so the kernel reads a single lane-dense (2, rows, 128) slab.
    rows = -(-n // LANES)
    # Tile rows: at least MIN_GRID_STEPS grid steps when the batch allows it
    # (dual-TC on v7x), capped by tile_rows, always a multiple of 8 sublanes.
    tr = _round_up(
        min(int(tile_rows), max(SUBLANES, -(-rows // MIN_GRID_STEPS))), SUBLANES
    )
    rows_pad = _round_up(rows, tr)
    n_pad = rows_pad * LANES

    nir = xf[:, NIR_IDX]
    red = xf[:, RED_IDX]
    stacked = jnp.stack([nir, red], axis=0)                      # (2, N)
    stacked = jnp.pad(stacked, ((0, 0), (0, n_pad - n)))          # zero pad: s = 0/(0+L)
    stacked = stacked.reshape(2, rows_pad, LANES)

    # ---- fold the tiny MLP into 30 (c_j, g_j) pairs + 2 scalars ----------------
    L_ = jnp.asarray(L, jnp.float32).reshape(())
    b2_ = jnp.asarray(b2, jnp.float32).reshape(-1)[0]
    w1e = jnp.asarray(w1, jnp.float32).reshape(-1) * (1.0 + L_)   # (30,), (1+L) folded in
    b1f = jnp.asarray(b1, jnp.float32).reshape(-1)                # (30,)
    w2f = jnp.asarray(w2, jnp.float32).reshape(-1)                # (30,)

    p = jnp.float32((1.0 + LEAKY_SLOPE) * 0.5)
    q = jnp.float32((1.0 - LEAKY_SLOPE) * 0.5)

    nonzero = w1e != 0.0
    safe_w1e = jnp.where(nonzero, w1e, 1.0)
    c = jnp.where(nonzero, b1f / safe_w1e, 0.0)                   # row0
    g = jnp.where(nonzero, q * w2f * jnp.abs(w1e), 0.0)           # row1
    K1 = p * jnp.sum(w2f * w1e)
    # Units with w1 == 0 contribute w2*LeakyReLU(b1); its |.| part goes to K0.
    K0 = (p * jnp.sum(w2f * b1f) + b2_
          + jnp.sum(jnp.where(nonzero, 0.0, q * w2f * jnp.abs(b1f))))
    row2 = (jnp.zeros((HIDDEN,), jnp.float32)
            .at[0].set(K1).at[1].set(K0).at[2].set(L_))
    params = jnp.stack([c, g, row2], axis=0)                      # (3, HIDDEN) -> SMEM

    # ---- kernel ----------------------------------------------------------------
    grid = (rows_pad // tr,)
    out2d = pl.pallas_call(
        _ann_savi_kernel,
        out_shape=jax.ShapeDtypeStruct((rows_pad, LANES), jnp.float32),
        grid_spec=pltpu.PrefetchScalarGridSpec(
            num_scalar_prefetch=0,
            grid=grid,
            in_specs=[
                pl.BlockSpec(memory_space=pltpu.MemorySpace.SMEM),     # packed params
                pl.BlockSpec((2, tr, LANES), lambda i: (0, i, 0)),     # stacked nir/red
            ],
            out_specs=pl.BlockSpec((tr, LANES), lambda i: (i, 0)),     # lane-dense output
        ),
        compiler_params=pltpu.CompilerParams(
            dimension_semantics=("parallel",),          # dual-TC sharding on v7x
            vmem_limit_bytes=32 * 1024 * 1024,          # safe on v5e/v6e/v7x
        ),
    )(params, stacked)

    flat = out2d.reshape(-1)
    if n == n_pad:                        # fast path: no extra slice copy
        return flat
    return flat[:n]


def _reference(x, L, w1, b1, w2, b2):
    """Pure-JAX reference mirroring the PyTorch forward."""
    nir = x[:, NIR_IDX]
    red = x[:, RED_IDX]
    s = (nir - red) / (nir + red + L) * (1.0 + L)
    s = s.reshape(-1, 1)
    h = s @ w1.T + b1                       # (N, 30)
    h = jnp.where(h > 0, h, LEAKY_SLOPE * h)
    out = h @ w2.T + b2                     # (N, 1)
    return out.reshape(-1)


if __name__ == "__main__":
    key = jax.random.PRNGKey(0)
    k_x, k_w1, k_b1, k_w2, k_b2, k_x2 = jax.random.split(key, 6)

    F = len(X_COLUMNS)         # input_size = 8 features

    # Deterministic synthetic parameters (same shapes as the nn.Module):
    L = jnp.float32(0.5)                                                  # nn.Parameter(0.5)
    w1 = jax.random.normal(k_w1, (HIDDEN, 1), jnp.float32) * 0.5          # Linear(1,30).weight
    b1 = jax.random.normal(k_b1, (HIDDEN,), jnp.float32) * 0.1            # Linear(1,30).bias
    w2 = jax.random.normal(k_w2, (1, HIDDEN), jnp.float32) * 0.5          # Linear(30,1).weight
    b2 = jax.random.normal(k_b2, (1,), jnp.float32) * 0.1                 # Linear(30,1).bias

    # Case 1: tiny batch (single tile, heavy-padding path).
    N1 = 8
    x1 = jax.random.uniform(k_x, (N1, F), jnp.float32, minval=0.05, maxval=1.0)
    out1 = jax.block_until_ready(ann_savi_forward(x1, L, w1, b1, w2, b2))
    ref1 = _reference(x1, L, w1, b1, w2, b2)
    assert out1.shape == (N1,), out1.shape
    assert jnp.allclose(out1, ref1, atol=1e-5, rtol=1e-4), (out1, ref1)

    # Case 2: non-multiple-of-128 batch with a small tile cap -> multi-step grid,
    # exercising the pipelined/padded path and the "parallel" grid axis.
    N2 = 2000
    x2 = jax.random.uniform(k_x2, (N2, F), jnp.float32, minval=0.05, maxval=1.0)
    out2 = jax.block_until_ready(ann_savi_forward(x2, L, w1, b1, w2, b2, tile_rows=8))
    ref2 = _reference(x2, L, w1, b1, w2, b2)
    assert out2.shape == (N2,), out2.shape
    assert jnp.allclose(out2, ref2, atol=1e-5, rtol=1e-4), (out2, ref2)

    print("KERNEL_OK")
</pallas_src>

<mosaic_0001>
module attributes {stable_mosaic.version = 11 : i64} {
  func.func @_ann_savi_kernel(%arg0: i32, %arg1: memref<3x30xf32, #tpu.memory_space<smem>>, %arg2: memref<2x8x128xf32, #tpu.memory_space<vmem>>, %arg3: memref<8x128xf32, #tpu.memory_space<vmem>>) attributes {dimension_semantics = [#tpu.dimension_semantics<parallel>], iteration_bounds = array<i64: 1>, scalar_prefetch = 0 : i64, scratch_operands = 0 : i64, tpu.core_type = #tpu.core_type<tc>, window_params = [{transform_indices = @transform_0, window_bounds = array<i64: 3, 30>}, {transform_indices = @transform_1, window_bounds = array<i64: 2, 8, 128>}, {transform_indices = @transform_2, window_bounds = array<i64: 8, 128>}]} {
    %c2 = arith.constant 2 : index
    %c0 = arith.constant 0 : index
    %0 = memref.load %arg1[%c2, %c0] : memref<3x30xf32, #tpu.memory_space<smem>>
    %c2_0 = arith.constant 2 : index
    %c1 = arith.constant 1 : index
    %1 = memref.load %arg1[%c2_0, %c1] : memref<3x30xf32, #tpu.memory_space<smem>>
    %c2_1 = arith.constant 2 : index
    %c2_2 = arith.constant 2 : index
    %2 = memref.load %arg1[%c2_1, %c2_2] : memref<3x30xf32, #tpu.memory_space<smem>>
    %c0_3 = arith.constant 0 : index
    %c0_4 = arith.constant 0 : index
    %c0_5 = arith.constant 0 : index
    %3 = vector.load %arg2[%c0_3, %c0_4, %c0_5] : memref<2x8x128xf32, #tpu.memory_space<vmem>>, vector<1x8x128xf32>
    %4 = vector.shape_cast %3 : vector<1x8x128xf32> to vector<8x128xf32>
    %c1_6 = arith.constant 1 : index
    %c0_7 = arith.constant 0 : index
    %c0_8 = arith.constant 0 : index
    %5 = vector.load %arg2[%c1_6, %c0_7, %c0_8] : memref<2x8x128xf32, #tpu.memory_space<vmem>>, vector<1x8x128xf32>
    %6 = vector.shape_cast %5 : vector<1x8x128xf32> to vector<8x128xf32>
    %7 = arith.subf %4, %6 : vector<8x128xf32>
    %8 = arith.addf %4, %6 : vector<8x128xf32>
    %9 = vector.broadcast %2 : f32 to vector<8x128xf32>
    %10 = arith.addf %8, %9 : vector<8x128xf32>
    %11 = arith.divf %7, %10 : vector<8x128xf32>
    %12 = vector.broadcast %0 : f32 to vector<8x128xf32>
    %13 = arith.mulf %11, %12 : vector<8x128xf32>
    %14 = vector.broadcast %1 : f32 to vector<8x128xf32>
    %15 = arith.addf %13, %14 : vector<8x128xf32>
    %c1_9 = arith.constant 1 : index
    %c0_10 = arith.constant 0 : index
    %16 = memref.load %arg1[%c1_9, %c0_10] : memref<3x30xf32, #tpu.memory_space<smem>>
    %c0_11 = arith.constant 0 : index
    %c0_12 = arith.constant 0 : index
    %17 = memref.load %arg1[%c0_11, %c0_12] : memref<3x30xf32, #tpu.memory_space<smem>>
    %18 = vector.broadcast %17 : f32 to vector<8x128xf32>
    %19 = arith.addf %11, %18 : vector<8x128xf32>
    %20 = math.absf %19 : vector<8x128xf32>
    %21 = vector.broadcast %16 : f32 to vector<8x128xf32>
    %22 = arith.mulf %21, %20 : vector<8x128xf32>
    %23 = arith.addf %15, %22 : vector<8x128xf32>
    %c1_13 = arith.constant 1 : index
    %c1_14 = arith.constant 1 : index
    %24 = memref.load %arg1[%c1_13, %c1_14] : memref<3x30xf32, #tpu.memory_space<smem>>
    %c0_15 = arith.constant 0 : index
    %c1_16 = arith.constant 1 : index
    %25 = memref.load %arg1[%c0_15, %c1_16] : memref<3x30xf32, #tpu.memory_space<smem>>
    %26 = vector.broadcast %25 : f32 to vector<8x128xf32>
    %27 = arith.addf %11, %26 : vector<8x128xf32>
    %28 = math.absf %27 : vector<8x128xf32>
    %29 = vector.broadcast %24 : f32 to vector<8x128xf32>
    %30 = arith.mulf %29, %28 : vector<8x128xf32>
    %31 = arith.addf %23, %30 : vector<8x128xf32>
    %c1_17 = arith.constant 1 : index
    %c2_18 = arith.constant 2 : index
    %32 = memref.load %arg1[%c1_17, %c2_18] : memref<3x30xf32, #tpu.memory_space<smem>>
    %c0_19 = arith.constant 0 : index
    %c2_20 = arith.constant 2 : index
    %33 = memref.load %arg1[%c0_19, %c2_20] : memref<3x30xf32, #tpu.memory_space<smem>>
    %34 = vector.broadcast %33 : f32 to vector<8x128xf32>
    %35 = arith.addf %11, %34 : vector<8x128xf32>
    %36 = math.absf %35 : vector<8x128xf32>
    %37 = vector.broadcast %32 : f32 to vector<8x128xf32>
    %38 = arith.mulf %37, %36 : vector<8x128xf32>
    %39 = arith.addf %31, %38 : vector<8x128xf32>
    %c1_21 = arith.constant 1 : index
    %c3 = arith.constant 3 : index
    %40 = memref.load %arg1[%c1_21, %c3] : memref<3x30xf32, #tpu.memory_space<smem>>
    %c0_22 = arith.constant 0 : index
    %c3_23 = arith.constant 3 : index
    %41 = memref.load %arg1[%c0_22, %c3_23] : memref<3x30xf32, #tpu.memory_space<smem>>
    %42 = vector.broadcast %41 : f32 to vector<8x128xf32>
    %43 = arith.addf %11, %42 : vector<8x128xf32>
    %44 = math.absf %43 : vector<8x128xf32>
    %45 = vector.broadcast %40 : f32 to vector<8x128xf32>
    %46 = arith.mulf %45, %44 : vector<8x128xf32>
    %47 = arith.addf %39, %46 : vector<8x128xf32>
    %c1_24 = arith.constant 1 : index
    %c4 = arith.constant 4 : index
    %48 = memref.load %arg1[%c1_24, %c4] : memref<3x30xf32, #tpu.memory_space<smem>>
    %c0_25 = arith.constant 0 : index
    %c4_26 = arith.constant 4 : index
    %49 = memref.load %arg1[%c0_25, %c4_26] : memref<3x30xf32, #tpu.memory_space<smem>>
    %50 = vector.broadcast %49 : f32 to vector<8x128xf32>
    %51 = arith.addf %11, %50 : vector<8x128xf32>
    %52 = math.absf %51 : vector<8x128xf32>
    %53 = vector.broadcast %48 : f32 to vector<8x128xf32>
    %54 = arith.mulf %53, %52 : vector<8x128xf32>
    %55 = arith.addf %47, %54 : vector<8x128xf32>
    %c1_27 = arith.constant 1 : index
    %c5 = arith.constant 5 : index
    %56 = memref.load %arg1[%c1_27, %c5] : memref<3x30xf32, #tpu.memory_space<smem>>
    %c0_28 = arith.constant 0 : index
    %c5_29 = arith.constant 5 : index
    %57 = memref.load %arg1[%c0_28, %c5_29] : memref<3x30xf32, #tpu.memory_space<smem>>
    %58 = vector.broadcast %57 : f32 to vector<8x128xf32>
    %59 = arith.addf %11, %58 : vector<8x128xf32>
    %60 = math.absf %59 : vector<8x128xf32>
    %61 = vector.broadcast %56 : f32 to vector<8x128xf32>
    %62 = arith.mulf %61, %60 : vector<8x128xf32>
    %63 = arith.addf %55, %62 : vector<8x128xf32>
    %c1_30 = arith.constant 1 : index
    %c6 = arith.constant 6 : index
    %64 = memref.load %arg1[%c1_30, %c6] : memref<3x30xf32, #tpu.memory_space<smem>>
    %c0_31 = arith.constant 0 : index
    %c6_32 = arith.constant 6 : index
    %65 = memref.load %arg1[%c0_31, %c6_32] : memref<3x30xf32, #tpu.memory_space<smem>>
    %66 = vector.broadcast %65 : f32 to vector<8x128xf32>
    %67 = arith.addf %11, %66 : vector<8x128xf32>
    %68 = math.absf %67 : vector<8x128xf32>
    %69 = vector.broadcast %64 : f32 to vector<8x128xf32>
    %70 = arith.mulf %69, %68 : vector<8x128xf32>
    %71 = arith.addf %63, %70 : vector<8x128xf32>
    %c1_33 = arith.constant 1 : index
    %c7 = arith.constant 7 : index
    %72 = memref.load %arg1[%c1_33, %c7] : memref<3x30xf32, #tpu.memory_space<smem>>
    %c0_34 = arith.constant 0 : index
    %c7_35 = arith.constant 7 : index
    %73 = memref.load %arg1[%c0_34, %c7_35] : memref<3x30xf32, #tpu.memory_space<smem>>
    %74 = vector.broadcast %73 : f32 to vector<8x128xf32>
    %75 = arith.addf %11, %74 : vector<8x128xf32>
    %76 = math.absf %75 : vector<8x128xf32>
    %77 = vector.broadcast %72 : f32 to vector<8x128xf32>
    %78 = arith.mulf %77, %76 : vector<8x128xf32>
    %79 = arith.addf %71, %78 : vector<8x128xf32>
    %c1_36 = arith.constant 1 : index
    %c8 = arith.constant 8 : index
    %80 = memref.load %arg1[%c1_36, %c8] : memref<3x30xf32, #tpu.memory_space<smem>>
    %c0_37 = arith.constant 0 : index
    %c8_38 = arith.constant 8 : index
    %81 = memref.load %arg1[%c0_37, %c8_38] : memref<3x30xf32, #tpu.memory_space<smem>>
    %82 = vector.broadcast %81 : f32 to vector<8x128xf32>
    %83 = arith.addf %11, %82 : vector<8x128xf32>
    %84 = math.absf %83 : vector<8x128xf32>
    %85 = vector.broadcast %80 : f32 to vector<8x128xf32>
    %86 = arith.mulf %85, %84 : vector<8x128xf32>
    %87 = arith.addf %79, %86 : vector<8x128xf32>
    %c1_39 = arith.constant 1 : index
    %c9 = arith.constant 9 : index
    %88 = memref.load %arg1[%c1_39, %c9] : memref<3x30xf32, #tpu.memory_space<smem>>
    %c0_40 = arith.constant 0 : index
    %c9_41 = arith.constant 9 : index
    %89 = memref.load %arg1[%c0_40, %c9_41] : memref<3x30xf32, #tpu.memory_space<smem>>
    %90 = vector.broadcast %89 : f32 to vector<8x128xf32>
    %91 = arith.addf %11, %90 : vector<8x128xf32>
    %92 = math.absf %91 : vector<8x128xf32>
    %93 = vector.broadcast %88 : f32 to vector<8x128xf32>
    %94 = arith.mulf %93, %92 : vector<8x128xf32>
    %95 = arith.addf %87, %94 : vector<8x128xf32>
    %c1_42 = arith.constant 1 : index
    %c10 = arith.constant 10 : index
    %96 = memref.load %arg1[%c1_42, %c10] : memref<3x30xf32, #tpu.memory_space<smem>>
    %c0_43 = arith.constant 0 : index
    %c10_44 = arith.constant 10 : index
    %97 = memref.load %arg1[%c0_43, %c10_44] : memref<3x30xf32, #tpu.memory_space<smem>>
    %98 = vector.broadcast %97 : f32 to vector<8x128xf32>
    %99 = arith.addf %11, %98 : vector<8x128xf32>
    %100 = math.absf %99 : vector<8x128xf32>
    %101 = vector.broadcast %96 : f32 to vector<8x128xf32>
    %102 = arith.mulf %101, %100 : vector<8x128xf32>
    %103 = arith.addf %95, %102 : vector<8x128xf32>
    %c1_45 = arith.constant 1 : index
    %c11 = arith.constant 11 : index
    %104 = memref.load %arg1[%c1_45, %c11] : memref<3x30xf32, #tpu.memory_space<smem>>
    %c0_46 = arith.constant 0 : index
    %c11_47 = arith.constant 11 : index
    %105 = memref.load %arg1[%c0_46, %c11_47] : memref<3x30xf32, #tpu.memory_space<smem>>
    %106 = vector.broadcast %105 : f32 to vector<8x128xf32>
    %107 = arith.addf %11, %106 : vector<8x128xf32>
    %108 = math.absf %107 : vector<8x128xf32>
    %109 = vector.broadcast %104 : f32 to vector<8x128xf32>
    %110 = arith.mulf %109, %108 : vector<8x128xf32>
    %111 = arith.addf %103, %110 : vector<8x128xf32>
    %c1_48 = arith.constant 1 : index
    %c12 = arith.constant 12 : index
    %112 = memref.load %arg1[%c1_48, %c12] : memref<3x30xf32, #tpu.memory_space<smem>>
    %c0_49 = arith.constant 0 : index
    %c12_50 = arith.constant 12 : index
    %113 = memref.load %arg1[%c0_49, %c12_50] : memref<3x30xf32, #tpu.memory_space<smem>>
    %114 = vector.broadcast %113 : f32 to vector<8x128xf32>
    %115 = arith.addf %11, %114 : vector<8x128xf32>
    %116 = math.absf %115 : vector<8x128xf32>
    %117 = vector.broadcast %112 : f32 to vector<8x128xf32>
    %118 = arith.mulf %117, %116 : vector<8x128xf32>
    %119 = arith.addf %111, %118 : vector<8x128xf32>
    %c1_51 = arith.constant 1 : index
    %c13 = arith.constant 13 : index
    %120 = memref.load %arg1[%c1_51, %c13] : memref<3x30xf32, #tpu.memory_space<smem>>
    %c0_52 = arith.constant 0 : index
    %c13_53 = arith.constant 13 : index
    %121 = memref.load %arg1[%c0_52, %c13_53] : memref<3x30xf32, #tpu.memory_space<smem>>
    %122 = vector.broadcast %121 : f32 to vector<8x128xf32>
    %123 = arith.addf %11, %122 : vector<8x128xf32>
    %124 = math.absf %123 : vector<8x128xf32>
    %125 = vector.broadcast %120 : f32 to vector<8x128xf32>
    %126 = arith.mulf %125, %124 : vector<8x128xf32>
    %127 = arith.addf %119, %126 : vector<8x128xf32>
    %c1_54 = arith.constant 1 : index
    %c14 = arith.constant 14 : index
    %128 = memref.load %arg1[%c1_54, %c14] : memref<3x30xf32, #tpu.memory_space<smem>>
    %c0_55 = arith.constant 0 : index
    %c14_56 = arith.constant 14 : index
    %129 = memref.load %arg1[%c0_55, %c14_56] : memref<3x30xf32, #tpu.memory_space<smem>>
    %130 = vector.broadcast %129 : f32 to vector<8x128xf32>
    %131 = arith.addf %11, %130 : vector<8x128xf32>
    %132 = math.absf %131 : vector<8x128xf32>
    %133 = vector.broadcast %128 : f32 to vector<8x128xf32>
    %134 = arith.mulf %133, %132 : vector<8x128xf32>
    %135 = arith.addf %127, %134 : vector<8x128xf32>
    %c1_57 = arith.constant 1 : index
    %c15 = arith.constant 15 : index
    %136 = memref.load %arg1[%c1_57, %c15] : memref<3x30xf32, #tpu.memory_space<smem>>
    %c0_58 = arith.constant 0 : index
    %c15_59 = arith.constant 15 : index
    %137 = memref.load %arg1[%c0_58, %c15_59] : memref<3x30xf32, #tpu.memory_space<smem>>
    %138 = vector.broadcast %137 : f32 to vector<8x128xf32>
    %139 = arith.addf %11, %138 : vector<8x128xf32>
    %140 = math.absf %139 : vector<8x128xf32>
    %141 = vector.broadcast %136 : f32 to vector<8x128xf32>
    %142 = arith.mulf %141, %140 : vector<8x128xf32>
    %143 = arith.addf %135, %142 : vector<8x128xf32>
    %c1_60 = arith.constant 1 : index
    %c16 = arith.constant 16 : index
    %144 = memref.load %arg1[%c1_60, %c16] : memref<3x30xf32, #tpu.memory_space<smem>>
    %c0_61 = arith.constant 0 : index
    %c16_62 = arith.constant 16 : index
    %145 = memref.load %arg1[%c0_61, %c16_62] : memref<3x30xf32, #tpu.memory_space<smem>>
    %146 = vector.broadcast %145 : f32 to vector<8x128xf32>
    %147 = arith.addf %11, %146 : vector<8x128xf32>
    %148 = math.absf %147 : vector<8x128xf32>
    %149 = vector.broadcast %144 : f32 to vector<8x128xf32>
    %150 = arith.mulf %149, %148 : vector<8x128xf32>
    %151 = arith.addf %143, %150 : vector<8x128xf32>
    %c1_63 = arith.constant 1 : index
    %c17 = arith.constant 17 : index
    %152 = memref.load %arg1[%c1_63, %c17] : memref<3x30xf32, #tpu.memory_space<smem>>
    %c0_64 = arith.constant 0 : index
    %c17_65 = arith.constant 17 : index
    %153 = memref.load %arg1[%c0_64, %c17_65] : memref<3x30xf32, #tpu.memory_space<smem>>
    %154 = vector.broadcast %153 : f32 to vector<8x128xf32>
    %155 = arith.addf %11, %154 : vector<8x128xf32>
    %156 = math.absf %155 : vector<8x128xf32>
    %157 = vector.broadcast %152 : f32 to vector<8x128xf32>
    %158 = arith.mulf %157, %156 : vector<8x128xf32>
    %159 = arith.addf %151, %158 : vector<8x128xf32>
    %c1_66 = arith.constant 1 : index
    %c18 = arith.constant 18 : index
    %160 = memref.load %arg1[%c1_66, %c18] : memref<3x30xf32, #tpu.memory_space<smem>>
    %c0_67 = arith.constant 0 : index
    %c18_68 = arith.constant 18 : index
    %161 = memref.load %arg1[%c0_67, %c18_68] : memref<3x30xf32, #tpu.memory_space<smem>>
    %162 = vector.broadcast %161 : f32 to vector<8x128xf32>
    %163 = arith.addf %11, %162 : vector<8x128xf32>
    %164 = math.absf %163 : vector<8x128xf32>
    %165 = vector.broadcast %160 : f32 to vector<8x128xf32>
    %166 = arith.mulf %165, %164 : vector<8x128xf32>
    %167 = arith.addf %159, %166 : vector<8x128xf32>
    %c1_69 = arith.constant 1 : index
    %c19 = arith.constant 19 : index
    %168 = memref.load %arg1[%c1_69, %c19] : memref<3x30xf32, #tpu.memory_space<smem>>
    %c0_70 = arith.constant 0 : index
    %c19_71 = arith.constant 19 : index
    %169 = memref.load %arg1[%c0_70, %c19_71] : memref<3x30xf32, #tpu.memory_space<smem>>
    %170 = vector.broadcast %169 : f32 to vector<8x128xf32>
    %171 = arith.addf %11, %170 : vector<8x128xf32>
    %172 = math.absf %171 : vector<8x128xf32>
    %173 = vector.broadcast %168 : f32 to vector<8x128xf32>
    %174 = arith.mulf %173, %172 : vector<8x128xf32>
    %175 = arith.addf %167, %174 : vector<8x128xf32>
    %c1_72 = arith.constant 1 : index
    %c20 = arith.constant 20 : index
    %176 = memref.load %arg1[%c1_72, %c20] : memref<3x30xf32, #tpu.memory_space<smem>>
    %c0_73 = arith.constant 0 : index
    %c20_74 = arith.constant 20 : index
    %177 = memref.load %arg1[%c0_73, %c20_74] : memref<3x30xf32, #tpu.memory_space<smem>>
    %178 = vector.broadcast %177 : f32 to vector<8x128xf32>
    %179 = arith.addf %11, %178 : vector<8x128xf32>
    %180 = math.absf %179 : vector<8x128xf32>
    %181 = vector.broadcast %176 : f32 to vector<8x128xf32>
    %182 = arith.mulf %181, %180 : vector<8x128xf32>
    %183 = arith.addf %175, %182 : vector<8x128xf32>
    %c1_75 = arith.constant 1 : index
    %c21 = arith.constant 21 : index
    %184 = memref.load %arg1[%c1_75, %c21] : memref<3x30xf32, #tpu.memory_space<smem>>
    %c0_76 = arith.constant 0 : index
    %c21_77 = arith.constant 21 : index
    %185 = memref.load %arg1[%c0_76, %c21_77] : memref<3x30xf32, #tpu.memory_space<smem>>
    %186 = vector.broadcast %185 : f32 to vector<8x128xf32>
    %187 = arith.addf %11, %186 : vector<8x128xf32>
    %188 = math.absf %187 : vector<8x128xf32>
    %189 = vector.broadcast %184 : f32 to vector<8x128xf32>
    %190 = arith.mulf %189, %188 : vector<8x128xf32>
    %191 = arith.addf %183, %190 : vector<8x128xf32>
    %c1_78 = arith.constant 1 : index
    %c22 = arith.constant 22 : index
    %192 = memref.load %arg1[%c1_78, %c22] : memref<3x30xf32, #tpu.memory_space<smem>>
    %c0_79 = arith.constant 0 : index
    %c22_80 = arith.constant 22 : index
    %193 = memref.load %arg1[%c0_79, %c22_80] : memref<3x30xf32, #tpu.memory_space<smem>>
    %194 = vector.broadcast %193 : f32 to vector<8x128xf32>
    %195 = arith.addf %11, %194 : vector<8x128xf32>
    %196 = math.absf %195 : vector<8x128xf32>
    %197 = vector.broadcast %192 : f32 to vector<8x128xf32>
    %198 = arith.mulf %197, %196 : vector<8x128xf32>
    %199 = arith.addf %191, %198 : vector<8x128xf32>
    %c1_81 = arith.constant 1 : index
    %c23 = arith.constant 23 : index
    %200 = memref.load %arg1[%c1_81, %c23] : memref<3x30xf32, #tpu.memory_space<smem>>
    %c0_82 = arith.constant 0 : index
    %c23_83 = arith.constant 23 : index
    %201 = memref.load %arg1[%c0_82, %c23_83] : memref<3x30xf32, #tpu.memory_space<smem>>
    %202 = vector.broadcast %201 : f32 to vector<8x128xf32>
    %203 = arith.addf %11, %202 : vector<8x128xf32>
    %204 = math.absf %203 : vector<8x128xf32>
    %205 = vector.broadcast %200 : f32 to vector<8x128xf32>
    %206 = arith.mulf %205, %204 : vector<8x128xf32>
    %207 = arith.addf %199, %206 : vector<8x128xf32>
    %c1_84 = arith.constant 1 : index
    %c24 = arith.constant 24 : index
    %208 = memref.load %arg1[%c1_84, %c24] : memref<3x30xf32, #tpu.memory_space<smem>>
    %c0_85 = arith.constant 0 : index
    %c24_86 = arith.constant 24 : index
    %209 = memref.load %arg1[%c0_85, %c24_86] : memref<3x30xf32, #tpu.memory_space<smem>>
    %210 = vector.broadcast %209 : f32 to vector<8x128xf32>
    %211 = arith.addf %11, %210 : vector<8x128xf32>
    %212 = math.absf %211 : vector<8x128xf32>
    %213 = vector.broadcast %208 : f32 to vector<8x128xf32>
    %214 = arith.mulf %213, %212 : vector<8x128xf32>
    %215 = arith.addf %207, %214 : vector<8x128xf32>
    %c1_87 = arith.constant 1 : index
    %c25 = arith.constant 25 : index
    %216 = memref.load %arg1[%c1_87, %c25] : memref<3x30xf32, #tpu.memory_space<smem>>
    %c0_88 = arith.constant 0 : index
    %c25_89 = arith.constant 25 : index
    %217 = memref.load %arg1[%c0_88, %c25_89] : memref<3x30xf32, #tpu.memory_space<smem>>
    %218 = vector.broadcast %217 : f32 to vector<8x128xf32>
    %219 = arith.addf %11, %218 : vector<8x128xf32>
    %220 = math.absf %219 : vector<8x128xf32>
    %221 = vector.broadcast %216 : f32 to vector<8x128xf32>
    %222 = arith.mulf %221, %220 : vector<8x128xf32>
    %223 = arith.addf %215, %222 : vector<8x128xf32>
    %c1_90 = arith.constant 1 : index
    %c26 = arith.constant 26 : index
    %224 = memref.load %arg1[%c1_90, %c26] : memref<3x30xf32, #tpu.memory_space<smem>>
    %c0_91 = arith.constant 0 : index
    %c26_92 = arith.constant 26 : index
    %225 = memref.load %arg1[%c0_91, %c26_92] : memref<3x30xf32, #tpu.memory_space<smem>>
    %226 = vector.broadcast %225 : f32 to vector<8x128xf32>
    %227 = arith.addf %11, %226 : vector<8x128xf32>
    %228 = math.absf %227 : vector<8x128xf32>
    %229 = vector.broadcast %224 : f32 to vector<8x128xf32>
    %230 = arith.mulf %229, %228 : vector<8x128xf32>
    %231 = arith.addf %223, %230 : vector<8x128xf32>
    %c1_93 = arith.constant 1 : index
    %c27 = arith.constant 27 : index
    %232 = memref.load %arg1[%c1_93, %c27] : memref<3x30xf32, #tpu.memory_space<smem>>
    %c0_94 = arith.constant 0 : index
    %c27_95 = arith.constant 27 : index
    %233 = memref.load %arg1[%c0_94, %c27_95] : memref<3x30xf32, #tpu.memory_space<smem>>
    %234 = vector.broadcast %233 : f32 to vector<8x128xf32>
    %235 = arith.addf %11, %234 : vector<8x128xf32>
    %236 = math.absf %235 : vector<8x128xf32>
    %237 = vector.broadcast %232 : f32 to vector<8x128xf32>
    %238 = arith.mulf %237, %236 : vector<8x128xf32>
    %239 = arith.addf %231, %238 : vector<8x128xf32>
    %c1_96 = arith.constant 1 : index
    %c28 = arith.constant 28 : index
    %240 = memref.load %arg1[%c1_96, %c28] : memref<3x30xf32, #tpu.memory_space<smem>>
    %c0_97 = arith.constant 0 : index
    %c28_98 = arith.constant 28 : index
    %241 = memref.load %arg1[%c0_97, %c28_98] : memref<3x30xf32, #tpu.memory_space<smem>>
    %242 = vector.broadcast %241 : f32 to vector<8x128xf32>
    %243 = arith.addf %11, %242 : vector<8x128xf32>
    %244 = math.absf %243 : vector<8x128xf32>
    %245 = vector.broadcast %240 : f32 to vector<8x128xf32>
    %246 = arith.mulf %245, %244 : vector<8x128xf32>
    %247 = arith.addf %239, %246 : vector<8x128xf32>
    %c1_99 = arith.constant 1 : index
    %c29 = arith.constant 29 : index
    %248 = memref.load %arg1[%c1_99, %c29] : memref<3x30xf32, #tpu.memory_space<smem>>
    %c0_100 = arith.constant 0 : index
    %c29_101 = arith.constant 29 : index
    %249 = memref.load %arg1[%c0_100, %c29_101] : memref<3x30xf32, #tpu.memory_space<smem>>
    %250 = vector.broadcast %249 : f32 to vector<8x128xf32>
    %251 = arith.addf %11, %250 : vector<8x128xf32>
    %252 = math.absf %251 : vector<8x128xf32>
    %253 = vector.broadcast %248 : f32 to vector<8x128xf32>
    %254 = arith.mulf %253, %252 : vector<8x128xf32>
    %255 = arith.addf %247, %254 : vector<8x128xf32>
    %c0_102 = arith.constant 0 : index
    %c0_103 = arith.constant 0 : index
    %256 = vector.load %arg3[%c0_102, %c0_103] : memref<8x128xf32, #tpu.memory_space<vmem>>, vector<8x128xf32>
    tpu.vector_store %arg3[%c0_102, %c0_103], %255 {strides = array<i32>} : memref<8x128xf32, #tpu.memory_space<vmem>>, vector<8x128xf32>,
    return
  }
  func.func @transform_0(%arg0: i32) -> (i32, i32) {
    %c0_i32 = arith.constant 0 : i32
    %c0_i32_0 = arith.constant 0 : i32
    %c0_i32_1 = arith.constant 0 : i32
    return %c0_i32, %c0_i32_0 : i32, i32
  }
  func.func @transform_1(%arg0: i32) -> (i32, i32, i32) {
    %c0_i32 = arith.constant 0 : i32
    %c0_i32_0 = arith.constant 0 : i32
    %c0_i32_1 = arith.constant 0 : i32
    return %c0_i32, %arg0, %c0_i32_0 : i32, i32, i32
  }
  func.func @transform_2(%arg0: i32) -> (i32, i32) {
    %c0_i32 = arith.constant 0 : i32
    %c0_i32_0 = arith.constant 0 : i32
    return %arg0, %c0_i32 : i32, i32
  }
}

</mosaic_0001>

<bundles_post_ra>
// kernel: ann_savi_forward.1
= control target key start
LH: loop header
LB: loop body
LE: loop exit
PB: predicated region body
PF: predicated region fallthrough
CT: control target
= control target key end

     0   :  { %7 = vsyncpa [#allocation3], 0  ;;  %s589_s0 = inlined_call_operand.vmem [shape: f32[3,30], index: 0, kind: input, shape index: {}]   ;;  %s590_s1 = inlined_call_operand.vmem [shape: f32[2,8,128], index: 1, kind: input, shape index: {}]   ;;  %s591_s2 = inlined_call_operand.vmem [shape: f32[8,128], index: 2, kind: output, shape index: {}]  }
   0x1   :  { %s14_s11 = sshll.u32 %s589_s0, 4  ;;  %s15_s11 = int_to_ptr.vmem [resolvable:$true] %s14_s11 }
   0x2   :  { %s352_s12 = scalar_lea.vmem %s15_s11, 64  ;;  %p357_p1 = scmp.lt.s32.totalorder %s15_s11, %s15_s11 }
   0x3   :  { %p353_p0 = scmp.ne.s32.totalorder %s15_s11, %s352_s12  ;;  %p358_p2 = scmp.lt.s32.totalorder %s352_s12, %s352_s12 }
   0x5   :  { %p359_p3 = por %p358_p2, %p357_p1 }
   0x7   :  { %p360_p4 = pnand %p359_p3, %p353_p0 }
   0x9   :  { %363 = shalt.err (!%p360_p4)
}
   0xa   :  { %s366_s13 = smov [#allocation2]  }
   0xb   :  { %17 = dma.vmem_to_smem %s15_s11, 64, %s366_s13, [#allocation3]  }
   0xc   :  { %364 = dma.done.wait [#allocation3], 64  }
   0xd   :  { %365 = vsyncadd [#allocation3], 4294967232 }
   0xe   :  { %23 = sfence }
   0xf   :  { %s288_s14 = sld [smem:[#allocation2 + $0x102]]  ;;  %v27_v0 = vld [vmem:[%s590_s1] sm:$0xff]  ;;  %v289_v1 = vld [vmem:[%s590_s1 + $0x8] sm:$0xff] }
  0x10   :  { %v31_v2 = vadd.f32 %v289_v1, %v27_v0  ;;  %s286_s18 = sld [smem:[#allocation2 + $0x100]]  ;;  %v30_v5 = vsub.f32 %v27_v0, %v289_v1 }
  0x11   :  { %s391_s19 = sld [smem:[#allocation2 + $0x101]] }
  0x12   :  { %s393_s20 = sld [smem:[#allocation2 + $0x80]] }
  0x13   :  { %s41_s21 = sld [smem:[#allocation2]] }
  0x14   :  { %s292_s22 = sld [smem:[#allocation2 + $0x1]] }
  0x15   :  { %v32_v3 = vstv %s288_s14  ;;  %s294_s23 = sld [smem:[#allocation2 + $0x2]] }
  0x16   :  { %v33_v4 = vadd.f32 %v32_v3, %v31_v2  ;;  %s296_s24 = sld [smem:[#allocation2 + $0x3]]  ;;  %v36_v7 = vstv %s286_s18 }
  0x17   :  { %s298_s25 = sld [smem:[#allocation2 + $0x4]]  ;;  %v38_v14 = vstv %s391_s19 }
  0x18   :  { %350 = vrcp.f32 %v33_v4  ;;  %s395_s26 = sld [smem:[#allocation2 + $0x81]]  ;;  %v45_v15 = vstv %s393_s20 }
  0x19   :  { %s397_s27 = sld [smem:[#allocation2 + $0x82]]  ;;  %v42_v8 = vstv %s41_s21 }
  0x1a   :  { %s399_s1 = sld [smem:[#allocation2 + $0x5]]  ;;  %v50_v9 = vstv %s292_s22 }
  0x1b   :  { %s401_s28 = sld [smem:[#allocation2 + $0x83]]  ;;  %v58_v10 = vstv %s294_s23 }
  0x1c   :  { %s403_s29 = sld [smem:[#allocation2 + $0x6]]  ;;  %v66_v12 = vstv %s296_s24 }
  0x1d   :  { %s405_s30 = sld [smem:[#allocation2 + $0x84]]  ;;  %v74_v13 = vstv %s298_s25 }
  0x1e   :  { %s407_s3 = sld [smem:[#allocation2 + $0x7]]  ;;  %v53_v20 = vstv %s395_s26 }
  0x1f   :  { %s411_s4 = sld [smem:[#allocation2 + $0x85]]  ;;  %v61_v28 = vstv %s397_s27 }
  0x20   :  { %s415_s5 = sld [smem:[#allocation2 + $0x8]]  ;;  %v82_v23 = vstv %s399_s1 }
  0x21   :  { %s421_s6 = sld [smem:[#allocation2 + $0x86]]  ;;  %v69_v34 = vstv %s401_s28 }
  0x22   :  { %s427_s7 = sld [smem:[#allocation2 + $0x9]]  ;;  %v90_v29 = vstv %s403_s29 }
  0x23   :  { %s431_s8 = sld [smem:[#allocation2 + $0xa]]  ;;  %v77_v40 = vstv %s405_s30 }
  0x24   :  { %s434_s9 = sld [smem:[#allocation2 + $0x87]]  ;;  %v98_v35 = vstv %s407_s3 }
  0x25   :  { %v351_v6 = vpop.eup %350  ;;  %s438_s10 = sld [smem:[#allocation2 + $0xb]]  ;;  %v85_v46 = vstv %s411_s4 }
  0x26   :  { %v409_v11 = vmul.f32 %v351_v6, %v30_v5  ;;  %s441_s11 = sld [smem:[#allocation2 + $0x88]]  ;;  %v106_v41 = vstv %s415_s5 }
  0x27   :  { %s445_s12 = sld [smem:[#allocation2 + $0xc]]  ;;  %v93_v52 = vstv %s421_s6 }
  0x28   :  { %v37_v16 = vmul.f32 %v36_v7, %v409_v11  ;;  %v43_v17 = vadd.f32 %v42_v8, %v409_v11  ;;  %v51_v18 = vadd.f32 %v50_v9, %v409_v11  ;;  %v59_v19 = vadd.f32 %v58_v10, %v409_v11  ;;  %s448_s13 = sld [smem:[#allocation2 + $0x89]] }
  0x29   :  { %v67_v21 = vadd.f32 %v66_v12, %v409_v11  ;;  %v75_v22 = vadd.f32 %v74_v13, %v409_v11  ;;  %v83_v33 = vadd.f32 %v82_v23, %v409_v11  ;;  %v91_v39 = vadd.f32 %v90_v29, %v409_v11  ;;  %s452_s14 = sld [smem:[#allocation2 + $0xd]] }
  0x2a   :  { %v39_v24 = vadd.f32 %v38_v14, %v37_v16  ;;  %v44_v25 = vand.u32 2147483647, %v43_v17  ;;  %v52_v26 = vand.u32 2147483647, %v51_v18  ;;  %v60_v27 = vand.u32 2147483647, %v59_v19 }
  0x2b   :  { %v68_v32 = vand.u32 2147483647, %v67_v21  ;;  %v76_v38 = vand.u32 2147483647, %v75_v22  ;;  %v84_v44 = vand.u32 2147483647, %v83_v33  ;;  %v99_v45 = vadd.f32 %v98_v35, %v409_v11 }
  0x2c   :  { %v46_v30 = vmul.f32 %v45_v15, %v44_v25  ;;  %v54_v31 = vmul.f32 %v53_v20, %v52_v26  ;;  %v62_v37 = vmul.f32 %v61_v28, %v60_v27  ;;  %v114_v47 = vstv %s427_s7  ;;  %s455_s15 = sld [smem:[#allocation2 + $0x8a]] }
  0x2d   :  { %v70_v43 = vmul.f32 %v69_v34, %v68_v32  ;;  %v78_v49 = vmul.f32 %v77_v40, %v76_v38  ;;  %v92_v50 = vand.u32 2147483647, %v91_v39  ;;  %v107_v51 = vadd.f32 %v106_v41, %v409_v11  ;;  %s459_s16 = sld [smem:[#allocation2 + $0xe]] }
  0x2e   :  { %v47_v36 = vadd.f32 %v46_v30, %v39_v24  ;;  %v122_v53 = vstv %s431_s8  ;;  %v86_v55 = vmul.f32 %v85_v46, %v84_v44  ;;  %v100_v56 = vand.u32 2147483647, %v99_v45  ;;  %s462_s17 = sld [smem:[#allocation2 + $0x8b]] }
  0x2f   :  { %v115_v57 = vadd.f32 %v114_v47, %v409_v11  ;;  %v101_v58 = vstv %s434_s9  ;;  %v130_v59 = vstv %s438_s10  ;;  %s466_s0 = sld [smem:[#allocation2 + $0xf]]  ;;  %v94_v61 = vmul.f32 %v93_v52, %v92_v50 }
  0x30   :  { %v55_v42 = vadd.f32 %v54_v31, %v47_v36  ;;  %v108_v62 = vand.u32 2147483647, %v107_v51  ;;  %v123_v63 = vadd.f32 %v122_v53, %v409_v11  ;;  %s469_s18 = sld [smem:[#allocation2 + $0x8c]]  ;;  %v109_v0 = vstv %s441_s11 }
  0x31   :  { %v138_v1 = vstv %s445_s12  ;;  %s473_s19 = sld [smem:[#allocation2 + $0x10]]  ;;  %v102_v3 = vmul.f32 %v101_v58, %v100_v56  ;;  %v116_v4 = vand.u32 2147483647, %v115_v57  ;;  %v131_v5 = vadd.f32 %v130_v59, %v409_v11 }
  0x32   :  { %v63_v48 = vadd.f32 %v62_v37, %v55_v42  ;;  %s476_s20 = sld [smem:[#allocation2 + $0x8d]]  ;;  %v117_v6 = vstv %s448_s13  ;;  %v146_v7 = vstv %s452_s14  ;;  %v110_v9 = vmul.f32 %v109_v0, %v108_v62 }
  0x33   :  { %s480_s21 = sld [smem:[#allocation2 + $0x11]]  ;;  %v124_v10 = vand.u32 2147483647, %v123_v63  ;;  %v139_v12 = vadd.f32 %v138_v1, %v409_v11  ;;  %v125_v13 = vstv %s455_s15  ;;  %v154_v14 = vstv %s459_s16 }
  0x34   :  { %v71_v54 = vadd.f32 %v70_v43, %v63_v48  ;;  %s483_s22 = sld [smem:[#allocation2 + $0x8e]]  ;;  %v118_v16 = vmul.f32 %v117_v6, %v116_v4  ;;  %v132_v17 = vand.u32 2147483647, %v131_v5  ;;  %v147_v18 = vadd.f32 %v146_v7, %v409_v11 }
  0x35   :  { %s487_s23 = sld [smem:[#allocation2 + $0x12]]  ;;  %v133_v19 = vstv %s462_s17  ;;  %v162_v20 = vstv %s466_s0  ;;  %v126_v22 = vmul.f32 %v125_v13, %v124_v10  ;;  %v140_v23 = vand.u32 2147483647, %v139_v12 }
  0x36   :  { %v79_v60 = vadd.f32 %v78_v49, %v71_v54  ;;  %s490_s24 = sld [smem:[#allocation2 + $0x8f]]  ;;  %v155_v24 = vadd.f32 %v154_v14, %v409_v11  ;;  %v141_v25 = vstv %s469_s18  ;;  %v134_v28 = vmul.f32 %v133_v19, %v132_v17 }
  0x37   :  { %s494_s25 = sld [smem:[#allocation2 + $0x13]]  ;;  %v170_v26 = vstv %s473_s19  ;;  %v148_v29 = vand.u32 2147483647, %v147_v18  ;;  %v163_v30 = vadd.f32 %v162_v20, %v409_v11  ;;  %v142_v34 = vmul.f32 %v141_v25, %v140_v23 }
  0x38   :  { %v87_v2 = vadd.f32 %v86_v55, %v79_v60  ;;  %s497_s26 = sld [smem:[#allocation2 + $0x90]]  ;;  %v149_v31 = vstv %s476_s20  ;;  %v156_v35 = vand.u32 2147483647, %v155_v24  ;;  %v171_v36 = vadd.f32 %v170_v26, %v409_v11 }
  0x39   :  { %s501_s27 = sld [smem:[#allocation2 + $0x14]]  ;;  %v178_v32 = vstv %s480_s21  ;;  %v150_v40 = vmul.f32 %v149_v31, %v148_v29  ;;  %v164_v41 = vand.u32 2147483647, %v163_v30 }
  0x3a   :  { %v95_v8 = vadd.f32 %v94_v61, %v87_v2  ;;  %s504_s1 = sld [smem:[#allocation2 + $0x91]]  ;;  %v157_v37 = vstv %s483_s22  ;;  %v179_v42 = vadd.f32 %v178_v32, %v409_v11  ;;  %v172_v47 = vand.u32 2147483647, %v171_v36 }
  0x3b   :  { %s508_s28 = sld [smem:[#allocation2 + $0x15]]  ;;  %v186_v38 = vstv %s487_s23  ;;  %v158_v46 = vmul.f32 %v157_v37, %v156_v35 }
  0x3c   :  { %v103_v15 = vadd.f32 %v102_v3, %v95_v8  ;;  %s511_s29 = sld [smem:[#allocation2 + $0x92]]  ;;  %v165_v43 = vstv %s490_s24  ;;  %v187_v48 = vadd.f32 %v186_v38, %v409_v11  ;;  %v180_v53 = vand.u32 2147483647, %v179_v42 }
  0x3d   :  { %s515_s30 = sld [smem:[#allocation2 + $0x16]]  ;;  %v194_v44 = vstv %s494_s25  ;;  %v166_v52 = vmul.f32 %v165_v43, %v164_v41 }
  0x3e   :  { %v111_v21 = vadd.f32 %v110_v9, %v103_v15  ;;  %s518_s3 = sld [smem:[#allocation2 + $0x93]]  ;;  %v173_v49 = vstv %s497_s26  ;;  %v195_v54 = vadd.f32 %v194_v44, %v409_v11  ;;  %v188_v59 = vand.u32 2147483647, %v187_v48 }
  0x3f   :  { %s522_s4 = sld [smem:[#allocation2 + $0x17]]  ;;  %v202_v50 = vstv %s501_s27  ;;  %v174_v58 = vmul.f32 %v173_v49, %v172_v47 }
  0x40   :  { %v119_v27 = vadd.f32 %v118_v16, %v111_v21  ;;  %s525_s5 = sld [smem:[#allocation2 + $0x94]]  ;;  %v181_v55 = vstv %s504_s1  ;;  %v203_v60 = vadd.f32 %v202_v50, %v409_v11  ;;  %v196_v1 = vand.u32 2147483647, %v195_v54 }
  0x41   :  { %s529_s6 = sld [smem:[#allocation2 + $0x18]]  ;;  %v210_v56 = vstv %s508_s28  ;;  %v182_v0 = vmul.f32 %v181_v55, %v180_v53 }
  0x42   :  { %v127_v33 = vadd.f32 %v126_v22, %v119_v27  ;;  %s532_s7 = sld [smem:[#allocation2 + $0x95]]  ;;  %v189_v61 = vstv %s511_s29  ;;  %v211_v2 = vadd.f32 %v210_v56, %v409_v11  ;;  %v204_v7 = vand.u32 2147483647, %v203_v60 }
  0x43   :  { %s536_s8 = sld [smem:[#allocation2 + $0x19]]  ;;  %v218_v62 = vstv %s515_s30  ;;  %v190_v6 = vmul.f32 %v189_v61, %v188_v59 }
  0x44   :  { %v135_v39 = vadd.f32 %v134_v28, %v127_v33  ;;  %s539_s9 = sld [smem:[#allocation2 + $0x96]]  ;;  %v197_v3 = vstv %s518_s3  ;;  %v219_v8 = vadd.f32 %v218_v62, %v409_v11  ;;  %v212_v14 = vand.u32 2147483647, %v211_v2 }
  0x45   :  { %s543_s10 = sld [smem:[#allocation2 + $0x1a]]  ;;  %v226_v4 = vstv %s522_s4  ;;  %v198_v13 = vmul.f32 %v197_v3, %v196_v1 }
  0x46   :  { %v143_v45 = vadd.f32 %v142_v34, %v135_v39  ;;  %s546_s11 = sld [smem:[#allocation2 + $0x97]]  ;;  %v205_v9 = vstv %s525_s5  ;;  %v227_v15 = vadd.f32 %v226_v4, %v409_v11  ;;  %v220_v20 = vand.u32 2147483647, %v219_v8 }
  0x47   :  { %s550_s12 = sld [smem:[#allocation2 + $0x1b]]  ;;  %v234_v10 = vstv %s529_s6  ;;  %v206_v19 = vmul.f32 %v205_v9, %v204_v7 }
  0x48   :  { %v151_v51 = vadd.f32 %v150_v40, %v143_v45  ;;  %s553_s13 = sld [smem:[#allocation2 + $0x98]]  ;;  %v213_v16 = vstv %s532_s7  ;;  %v235_v21 = vadd.f32 %v234_v10, %v409_v11  ;;  %v228_v26 = vand.u32 2147483647, %v227_v15 }
  0x49   :  { %s557_s14 = sld [smem:[#allocation2 + $0x1c]]  ;;  %v242_v17 = vstv %s536_s8  ;;  %v214_v25 = vmul.f32 %v213_v16, %v212_v14 }
  0x4a   :  { %v159_v57 = vadd.f32 %v158_v46, %v151_v51  ;;  %s560_s15 = sld [smem:[#allocation2 + $0x99]]  ;;  %v221_v22 = vstv %s539_s9  ;;  %v243_v27 = vadd.f32 %v242_v17, %v409_v11  ;;  %v236_v32 = vand.u32 2147483647, %v235_v21 }
  0x4b   :  { %s564_s16 = sld [smem:[#allocation2 + $0x1d]]  ;;  %v250_v23 = vstv %s543_s10  ;;  %v222_v31 = vmul.f32 %v221_v22, %v220_v20 }
  0x4c   :  { %v167_v63 = vadd.f32 %v166_v52, %v159_v57  ;;  %s568_s17 = sld [smem:[#allocation2 + $0x9a]]  ;;  %v229_v28 = vstv %s546_s11  ;;  %v251_v33 = vadd.f32 %v250_v23, %v409_v11  ;;  %v244_v38 = vand.u32 2147483647, %v243_v27 }
  0x4d   :  { %s573_s0 = sld [smem:[#allocation2 + $0x9b]]  ;;  %v258_v29 = vstv %s550_s12  ;;  %v230_v37 = vmul.f32 %v229_v28, %v228_v26 }
  0x4e   :  { %v175_v5 = vadd.f32 %v174_v58, %v167_v63  ;;  %v237_v34 = vstv %s553_s13  ;;  %s345_s18 = sld [smem:[#allocation2 + $0x9c]]  ;;  %v259_v39 = vadd.f32 %v258_v29, %v409_v11  ;;  %v252_v44 = vand.u32 2147483647, %v251_v33 }
  0x4f   :  { %v266_v35 = vstv %s557_s14  ;;  %s347_s19 = sld [smem:[#allocation2 + $0x9d]]  ;;  %v238_v43 = vmul.f32 %v237_v34, %v236_v32 }
  0x50   :  { %v183_v12 = vadd.f32 %v182_v0, %v175_v5  ;;  %v245_v40 = vstv %s560_s15  ;;  %v267_v45 = vadd.f32 %v266_v35, %v409_v11  ;;  %v260_v49 = vand.u32 2147483647, %v259_v39 }
  0x51   :  { %v274_v41 = vstv %s564_s16  ;;  %v246_v48 = vmul.f32 %v245_v40, %v244_v38 }
  0x52   :  { %v191_v18 = vadd.f32 %v190_v6, %v183_v12  ;;  %v253_v46 = vstv %s568_s17  ;;  %v275_v50 = vadd.f32 %v274_v41, %v409_v11  ;;  %v268_v54 = vand.u32 2147483647, %v267_v45 }
  0x53   :  { %v261_v51 = vstv %s573_s0  ;;  %v254_v53 = vmul.f32 %v253_v46, %v252_v44 }
  0x54   :  { %v199_v24 = vadd.f32 %v198_v13, %v191_v18  ;;  %v269_v55 = vstv %s345_s18  ;;  %v262_v57 = vmul.f32 %v261_v51, %v260_v49  ;;  %v276_v58 = vand.u32 2147483647, %v275_v50 }
  0x55   :  { %v277_v59 = vstv %s347_s19  ;;  %v270_v61 = vmul.f32 %v269_v55, %v268_v54 }
  0x56   :  { %v207_v30 = vadd.f32 %v206_v19, %v199_v24  ;;  %v278_v63 = vmul.f32 %v277_v59, %v276_v58 }
  0x58   :  { %v215_v36 = vadd.f32 %v214_v25, %v207_v30 }
  0x5a   :  { %v223_v42 = vadd.f32 %v222_v31, %v215_v36 }
  0x5c   :  { %v231_v47 = vadd.f32 %v230_v37, %v223_v42 }
  0x5e   :  { %v239_v52 = vadd.f32 %v238_v43, %v231_v47 }
  0x60   :  { %v247_v56 = vadd.f32 %v246_v48, %v239_v52 }
  0x62   :  { %v255_v60 = vadd.f32 %v254_v53, %v247_v56 }
  0x64   :  { %v263_v62 = vadd.f32 %v262_v57, %v255_v60 }
  0x66   :  { %v271_v0 = vadd.f32 %v270_v61, %v263_v62 }
  0x68   :  { %v279_v1 = vadd.f32 %v278_v63, %v271_v0 }
  0x6a   :  { %280 = vst [vmem:[%s591_s2] sm:$0xff] %v279_v1 }
  0x6b   :  { %285 = vsyncpa [#allocation3], 1 }

</bundles_post_ra>
